<compile_context>
chip_gen: v7x
topology: tpu7x:2x2x1
jax: 0.10.0
libtpu: 0.0.40
codegen_flags: <defaults>
</compile_context>

<pallas_src>
import functools

import jax
import jax.numpy as jnp
from jax import lax
from jax.experimental import pallas as pl
from jax.experimental.pallas import tpu as pltpu


# --------------------------- kernel helpers ---------------------------------
def _conv1d_same_mxu(pad_ref, w_ref, a, *, K, fused):
    """'same' Conv1d of one (C, L) fp32 tile as MXU matmul(s) with fp32 acc.

    pad_ref is a (C, L + 2*pad) VMEM scratch in the MXU dtype: halo columns are
    zeroed, the centre is filled with a single per-slab cast, and the K taps are
    static lane-slices of it (the only unavoidable shifted accesses).
    """
    C, L = a.shape
    pad = (K - 1) // 2
    if pad:
        # Re-zero the halo every step: with "parallel" grid semantics each core
        # gets its own scratch, so a program_id==0 init would be unsafe.
        pad_ref[:, 0:pad] = jnp.zeros((C, pad), pad_ref.dtype)
        pad_ref[:, pad + L:2 * pad + L] = jnp.zeros((C, pad), pad_ref.dtype)
    pad_ref[:, pad:pad + L] = a.astype(pad_ref.dtype)       # single slab cast

    if fused:
        # Small-C path: fold the K taps into one (Cout, K*C) @ (K*C, L) matmul.
        slab = jnp.concatenate([pad_ref[:, t:t + L] for t in range(K)], axis=0)
        return jnp.dot(w_ref[...], slab, preferred_element_type=jnp.float32)

    # Large-C path: K accumulated matmuls; no K-times-duplicated im2col slab.
    acc = jnp.dot(w_ref[0], pad_ref[:, 0:L], preferred_element_type=jnp.float32)
    for t in range(1, K):
        acc = acc + jnp.dot(w_ref[t], pad_ref[:, t:t + L],
                            preferred_element_type=jnp.float32)
    return acc


def _conv_stats_kernel(x_ref, w_ref, h_ref, sum_ref, ssq_ref, pad_ref, *, K, fused):
    h = _conv1d_same_mxu(pad_ref, w_ref, x_ref[...], K=K, fused=fused)  # (Cout, L)
    h_ref[...] = h
    sum_ref[...] = jnp.sum(h, axis=1, keepdims=True)          # per-sample partials
    ssq_ref[...] = jnp.sum(h * h, axis=1, keepdims=True)


def _bn_relu_conv_stats_kernel(h1_ref, sc_ref, sh_ref, w_ref,
                               h2_ref, sum_ref, ssq_ref, pad_ref, *, K, fused):
    a = jnp.maximum(h1_ref[...] * sc_ref[...] + sh_ref[...], 0.0)   # BN1 + ReLU, fp32
    h2 = _conv1d_same_mxu(pad_ref, w_ref, a, K=K, fused=fused)
    h2_ref[...] = h2
    sum_ref[...] = jnp.sum(h2, axis=1, keepdims=True)
    ssq_ref[...] = jnp.sum(h2 * h2, axis=1, keepdims=True)


def _bn_relu_res_kernel(*refs, res_mode, factor):
    if res_mode == "none":
        h2_ref, sc_ref, sh_ref, o_ref = refs
        x_ref = None
    else:
        h2_ref, sc_ref, sh_ref, x_ref, o_ref = refs
    out = jnp.maximum(h2_ref[...] * sc_ref[...] + sh_ref[...], 0.0)  # BN2 + ReLU
    if res_mode == "same":
        out = out + x_ref[...]
    elif res_mode == "tile":
        # PyTorch x.repeat(1, factor, 1) == channel-axis tiling.
        out = out + jnp.concatenate([x_ref[...]] * factor, axis=0)
    o_ref[...] = out.astype(o_ref.dtype)


# --------------------------- host-side glue ----------------------------------
def _bn_scale_shift(sum_per, ssq_per, gamma, beta, count, eps=1e-5):
    # TODO(synk): E[x^2] - mean^2 cancels badly for large-mean activations;
    # switch to centered / Welford accumulation for such regimes.
    s = jnp.sum(sum_per, axis=0)                              # (Cout, 1)
    q = jnp.sum(ssq_per, axis=0)
    mean = s / count
    var = jnp.maximum(q / count - mean * mean, 0.0)
    scale = gamma.reshape(-1, 1).astype(jnp.float32) * lax.rsqrt(var + eps)
    shift = beta.reshape(-1, 1).astype(jnp.float32) - mean * scale
    return scale, shift


def resblock_forward(x, w1, w2, g1, b1, g2, b2, *,
                     conv_dtype=jnp.bfloat16, fused_threshold=128):
    N, Cin, L = x.shape
    Cout, cin_w, K = w1.shape
    assert cin_w == Cin and w2.shape == (Cout, Cout, K)
    if K % 2 != 1:
        raise NotImplementedError("only odd kernel_size (symmetric 'same' pad)")
    pad = (K - 1) // 2

    if Cin == Cout:
        res_mode, factor = "same", 1
    elif Cin < Cout:
        if Cout % Cin != 0:
            raise ValueError("n_output must be a multiple of n_input for the residual")
        res_mode, factor = "tile", Cout // Cin
    else:
        res_mode, factor = "none", 0

    fused1 = Cin < fused_threshold          # fused (Cout, K*C) matmul for small C
    fused2 = Cout < fused_threshold         # K accumulated matmuls otherwise
    cd_size = jnp.dtype(conv_dtype).itemsize
    count = float(N * L)

    x32 = x.astype(jnp.float32)

    def prep_w(w, fused):
        co, ci, k = w.shape
        if fused:   # (Cout, K*C): element [o, t*C + c] = w[o, c, t]
            return jnp.transpose(w, (0, 2, 1)).reshape(co, k * ci).astype(conv_dtype)
        return jnp.transpose(w, (2, 0, 1)).astype(conv_dtype)   # (K, Cout, C)

    w1_r = prep_w(w1, fused1)
    w2_r = prep_w(w2, fused2)

    def full_spec(arr):
        nd = arr.ndim
        return pl.BlockSpec(tuple(arr.shape), lambda n, _nd=nd: (0,) * _nd)

    def cparams(live_bytes):
        vmem = int(min(48 << 20, max(16 << 20, 2 * live_bytes + (2 << 20))))
        return pltpu.CompilerParams(dimension_semantics=("parallel",),
                                    vmem_limit_bytes=vmem)

    def conv_live_bytes(ci, co, fused):
        blk = 2 * (ci * L * 4 + co * L * 4 + 2 * co * 4)       # double-buffered blocks
        w_b = K * ci * co * cd_size
        scr = ci * (L + 2 * pad) * cd_size
        slab = K * ci * L * cd_size if fused else co * L * 4
        return blk + w_b + scr + slab + 3 * co * L * 4          # temp headroom

    x_spec = pl.BlockSpec((None, Cin, L), lambda n: (n, 0, 0))
    h_spec = pl.BlockSpec((None, Cout, L), lambda n: (n, 0, 0))
    stats_spec = pl.BlockSpec((None, Cout, 1), lambda n: (n, 0, 0))
    vec_spec = pl.BlockSpec((Cout, 1), lambda n: (0, 0))
    h_shape = jax.ShapeDtypeStruct((N, Cout, L), jnp.float32)
    stats_shape = jax.ShapeDtypeStruct((N, Cout, 1), jnp.float32)

    # ---- call 1: conv1 + per-sample BN1 partial stats -----------------------
    h1, s1, q1 = pl.pallas_call(
        functools.partial(_conv_stats_kernel, K=K, fused=fused1),
        grid=(N,),
        in_specs=[x_spec, full_spec(w1_r)],
        out_specs=[h_spec, stats_spec, stats_spec],
        out_shape=[h_shape, stats_shape, stats_shape],
        scratch_shapes=[pltpu.VMEM((Cin, L + 2 * pad), conv_dtype)],
        compiler_params=cparams(conv_live_bytes(Cin, Cout, fused1)),
        cost_estimate=pl.CostEstimate(
            flops=2 * N * L * K * Cin * Cout, transcendentals=0,
            bytes_accessed=int(N * Cin * L * 4 + N * Cout * L * 4
                               + K * Cin * Cout * cd_size)),
    )(x32, w1_r)

    scale1, shift1 = _bn_scale_shift(s1, q1, g1, b1, count)

    # ---- call 2: BN1 apply + ReLU + conv2 + per-sample BN2 partial stats ----
    h2, s2, q2 = pl.pallas_call(
        functools.partial(_bn_relu_conv_stats_kernel, K=K, fused=fused2),
        grid=(N,),
        in_specs=[h_spec, vec_spec, vec_spec, full_spec(w2_r)],
        out_specs=[h_spec, stats_spec, stats_spec],
        out_shape=[h_shape, stats_shape, stats_shape],
        scratch_shapes=[pltpu.VMEM((Cout, L + 2 * pad), conv_dtype)],
        compiler_params=cparams(conv_live_bytes(Cout, Cout, fused2)),
        cost_estimate=pl.CostEstimate(
            flops=2 * N * L * K * Cout * Cout, transcendentals=0,
            bytes_accessed=int(2 * N * Cout * L * 4 + K * Cout * Cout * cd_size)),
    )(h1, scale1, shift1, w2_r)

    scale2, shift2 = _bn_scale_shift(s2, q2, g2, b2, count)

    # ---- call 3: BN2 apply + ReLU + residual add ----------------------------
    args = [h2, scale2, shift2]
    in_specs = [h_spec, vec_spec, vec_spec]
    if res_mode != "none":
        args.append(x32)
        in_specs.append(x_spec)
    out = pl.pallas_call(
        functools.partial(_bn_relu_res_kernel, res_mode=res_mode, factor=factor),
        grid=(N,),
        in_specs=in_specs,
        out_specs=pl.BlockSpec((None, Cout, L), lambda n: (n, 0, 0)),
        out_shape=jax.ShapeDtypeStruct((N, Cout, L), x.dtype),
        compiler_params=cparams(2 * (2 * Cout * L * 4 + Cin * L * 4)),
        cost_estimate=pl.CostEstimate(
            flops=4 * N * Cout * L, transcendentals=0,
            bytes_accessed=int(2 * N * Cout * L * 4 + N * Cin * L * 4)),
    )(*args)
    return out


# ---------------- pure-JAX reference (for correctness check) -----------------
def _conv1d_same_ref(x, w, conv_dtype):
    return lax.conv_general_dilated(
        x.astype(conv_dtype), w.astype(conv_dtype), window_strides=(1,),
        padding="SAME", dimension_numbers=("NCH", "OIH", "NCH"),
        preferred_element_type=jnp.float32)


def _bn_relu_ref(h, gamma, beta, eps=1e-5):
    mean = jnp.mean(h, axis=(0, 2), keepdims=True)
    var = jnp.mean(jnp.square(h - mean), axis=(0, 2), keepdims=True)
    hn = (h - mean) * lax.rsqrt(var + eps)
    return jnp.maximum(hn * gamma[None, :, None] + beta[None, :, None], 0.0)


def resblock_reference(x, w1, w2, g1, b1, g2, b2, conv_dtype=jnp.float32):
    Cin, Cout = x.shape[1], w1.shape[0]
    out = _bn_relu_ref(_conv1d_same_ref(x, w1, conv_dtype), g1, b1)
    out = _bn_relu_ref(_conv1d_same_ref(out, w2, conv_dtype), g2, b2)
    if Cin == Cout:
        out = out + x
    elif Cin < Cout:
        out = out + jnp.tile(x, (1, Cout // Cin, 1))
    return out


if __name__ == "__main__":
    N, Cin, Cout, L, K = 2, 4, 8, 16, 3

    key = jax.random.PRNGKey(0)
    kx, k1, k2, kg1, kb1, kg2, kb2 = jax.random.split(key, 7)
    x = jax.random.normal(kx, (N, Cin, L), jnp.float32)
    w1 = jax.random.normal(k1, (Cout, Cin, K), jnp.float32) * 0.2
    w2 = jax.random.normal(k2, (Cout, Cout, K), jnp.float32) * 0.2
    g1 = 1.0 + 0.1 * jax.random.normal(kg1, (Cout,), jnp.float32)
    b1 = 0.1 * jax.random.normal(kb1, (Cout,), jnp.float32)
    g2 = 1.0 + 0.1 * jax.random.normal(kg2, (Cout,), jnp.float32)
    b2 = 0.1 * jax.random.normal(kb2, (Cout,), jnp.float32)

    # 1) fp32 MXU path, fused-im2col convs, Cin < Cout (tiled residual).
    f32 = jax.jit(functools.partial(resblock_forward, conv_dtype=jnp.float32))
    out32 = jax.block_until_ready(f32(x, w1, w2, g1, b1, g2, b2))
    ref32 = resblock_reference(x, w1, w2, g1, b1, g2, b2, conv_dtype=jnp.float32)
    assert out32.shape == (N, Cout, L)
    err32 = float(jnp.max(jnp.abs(out32 - ref32)))
    assert jnp.allclose(out32, ref32, atol=5e-4, rtol=5e-4), f"fp32 max abs err {err32}"

    # 2) default bf16-MXU path vs a precision-matched reference.
    outbf = jax.block_until_ready(jax.jit(resblock_forward)(x, w1, w2, g1, b1, g2, b2))
    refbf = resblock_reference(x, w1, w2, g1, b1, g2, b2, conv_dtype=jnp.bfloat16)
    errbf = float(jnp.max(jnp.abs(outbf - refbf)))
    assert jnp.allclose(outbf, refbf, atol=2e-2, rtol=2e-2), f"bf16 max abs err {errbf}"

    # 3) identity-residual branch (Cin == Cout), fp32.
    xs = jax.random.normal(kx, (N, Cout, L), jnp.float32)
    w1s = jax.random.normal(k1, (Cout, Cout, K), jnp.float32) * 0.2
    outs = jax.block_until_ready(f32(xs, w1s, w2, g1, b1, g2, b2))
    refs = resblock_reference(xs, w1s, w2, g1, b1, g2, b2, conv_dtype=jnp.float32)
    errs = float(jnp.max(jnp.abs(outs - refs)))
    assert jnp.allclose(outs, refs, atol=5e-4, rtol=5e-4), f"same-res max abs err {errs}"

    # 4) K-accumulated-matmul path (fused_threshold=0) + no-residual branch
    #    (Cin > Cout), fp32.
    Cb, Cs = 8, 4
    xb = jax.random.normal(kx, (N, Cb, L), jnp.float32)
    w1b = jax.random.normal(k1, (Cs, Cb, K), jnp.float32) * 0.2
    w2b = jax.random.normal(k2, (Cs, Cs, K), jnp.float32) * 0.2
    f32u = jax.jit(functools.partial(resblock_forward, conv_dtype=jnp.float32,
                                     fused_threshold=0))
    outb = jax.block_until_ready(
        f32u(xb, w1b, w2b, g1[:Cs], b1[:Cs], g2[:Cs], b2[:Cs]))
    refb = resblock_reference(xb, w1b, w2b, g1[:Cs], b1[:Cs], g2[:Cs], b2[:Cs],
                              conv_dtype=jnp.float32)
    errb = float(jnp.max(jnp.abs(outb - refb)))
    assert jnp.allclose(outb, refb, atol=5e-4, rtol=5e-4), f"k-matmul max abs err {errb}"

    print("KERNEL_OK")
</pallas_src>

<mosaic_0001>
module attributes {stable_mosaic.version = 11 : i64} {
  func.func @_conv_stats_kernel(%arg0: i32, %arg1: memref<1x4x16xf32, #tpu.memory_space<vmem>>, %arg2: memref<8x12xf32, #tpu.memory_space<vmem>>, %arg3: memref<1x8x16xf32, #tpu.memory_space<vmem>>, %arg4: memref<1x8x1xf32, #tpu.memory_space<vmem>>, %arg5: memref<1x8x1xf32, #tpu.memory_space<vmem>>, %arg6: memref<4x18xf32, #tpu.memory_space<vmem>>) attributes {dimension_semantics = [#tpu.dimension_semantics<parallel>], iteration_bounds = array<i64: 2>, scalar_prefetch = 0 : i64, scratch_operands = 1 : i64, tpu.core_type = #tpu.core_type<tc>, window_params = [{transform_indices = @transform_0, window_bounds = array<i64: 1, 4, 16>}, {pipeline_mode = #tpu.pipeline_mode<synchronous>, transform_indices = @transform_1, window_bounds = array<i64: 8, 12>}, {transform_indices = @transform_2, window_bounds = array<i64: 1, 8, 16>}, {transform_indices = @transform_3, window_bounds = array<i64: 1, 8, 1>}, {transform_indices = @transform_4, window_bounds = array<i64: 1, 8, 1>}]} {
    %c0 = arith.constant 0 : index
    %c0_0 = arith.constant 0 : index
    %c0_1 = arith.constant 0 : index
    %0 = vector.load %arg1[%c0, %c0_0, %c0_1] : memref<1x4x16xf32, #tpu.memory_space<vmem>>, vector<1x4x16xf32>
    %1 = vector.shape_cast %0 : vector<1x4x16xf32> to vector<4x16xf32>
    %cst = arith.constant 0.000000e+00 : f32
    %2 = vector.broadcast %cst : f32 to vector<4x1xf32>
    %c0_2 = arith.constant 0 : index
    %c0_3 = arith.constant 0 : index
    %3 = vector.load %arg6[%c0_2, %c0_3] : memref<4x18xf32, #tpu.memory_space<vmem>>, vector<4x1xf32>
    tpu.vector_store %arg6[%c0_2, %c0_3], %2 {strides = array<i32>} : memref<4x18xf32, #tpu.memory_space<vmem>>, vector<4x1xf32>,
    %cst_4 = arith.constant 0.000000e+00 : f32
    %4 = vector.broadcast %cst_4 : f32 to vector<4x1xf32>
    %c0_5 = arith.constant 0 : index
    %c17 = arith.constant 17 : index
    %5 = vector.load %arg6[%c0_5, %c17] : memref<4x18xf32, #tpu.memory_space<vmem>>, vector<4x1xf32>
    tpu.vector_store %arg6[%c0_5, %c17], %4 {strides = array<i32>} : memref<4x18xf32, #tpu.memory_space<vmem>>, vector<4x1xf32>,
    %c0_6 = arith.constant 0 : index
    %c1 = arith.constant 1 : index
    %6 = vector.load %arg6[%c0_6, %c1] : memref<4x18xf32, #tpu.memory_space<vmem>>, vector<4x16xf32>
    tpu.vector_store %arg6[%c0_6, %c1], %1 {strides = array<i32>} : memref<4x18xf32, #tpu.memory_space<vmem>>, vector<4x16xf32>,
    %c0_7 = arith.constant 0 : index
    %c0_8 = arith.constant 0 : index
    %7 = vector.load %arg6[%c0_7, %c0_8] : memref<4x18xf32, #tpu.memory_space<vmem>>, vector<4x16xf32>
    %c0_9 = arith.constant 0 : index
    %c1_10 = arith.constant 1 : index
    %8 = vector.load %arg6[%c0_9, %c1_10] : memref<4x18xf32, #tpu.memory_space<vmem>>, vector<4x16xf32>
    %c0_11 = arith.constant 0 : index
    %c2 = arith.constant 2 : index
    %9 = vector.load %arg6[%c0_11, %c2] : memref<4x18xf32, #tpu.memory_space<vmem>>, vector<4x16xf32>
    %10 = tpu.concatenate %7, %8, %9 in 0 : vector<4x16xf32>, vector<4x16xf32>, vector<4x16xf32> -> vector<12x16xf32>
    %c0_12 = arith.constant 0 : index
    %c0_13 = arith.constant 0 : index
    %11 = vector.load %arg2[%c0_12, %c0_13] : memref<8x12xf32, #tpu.memory_space<vmem>>, vector<8x12xf32>
    %cst_14 = arith.constant dense<0.000000e+00> : vector<8x16xf32>
    %12 = tpu.matmul %11, %10, %cst_14 {dimension_numbers = #tpu.dot_dimension_numbers<[1], [0], [0], [1], [0, 0, 1, 1], [], []>} : vector<8x12xf32>, vector<12x16xf32>, vector<8x16xf32> -> vector<8x16xf32>
    %c0_15 = arith.constant 0 : index
    %c0_16 = arith.constant 0 : index
    %c0_17 = arith.constant 0 : index
    %13 = vector.load %arg3[%c0_15, %c0_16, %c0_17] : memref<1x8x16xf32, #tpu.memory_space<vmem>>, vector<1x8x16xf32>
    %14 = vector.shape_cast %13 : vector<1x8x16xf32> to vector<8x16xf32>
    %15 = vector.shape_cast %12 : vector<8x16xf32> to vector<1x8x16xf32>
    tpu.vector_store %arg3[%c0_15, %c0_16, %c0_17], %15 {strides = array<i32>} : memref<1x8x16xf32, #tpu.memory_space<vmem>>, vector<1x8x16xf32>,
    %cst_18 = arith.constant dense<0.000000e+00> : vector<8xf32>
    %16 = vector.multi_reduction <add>, %12, %cst_18 [1] : vector<8x16xf32> to vector<8xf32>
    %17 = vector.shape_cast %16 : vector<8xf32> to vector<8x1xf32>
    %c0_19 = arith.constant 0 : index
    %c0_20 = arith.constant 0 : index
    %c0_21 = arith.constant 0 : index
    %18 = vector.load %arg4[%c0_19, %c0_20, %c0_21] : memref<1x8x1xf32, #tpu.memory_space<vmem>>, vector<1x8x1xf32>
    %19 = vector.shape_cast %18 : vector<1x8x1xf32> to vector<8x1xf32>
    %20 = vector.shape_cast %17 : vector<8x1xf32> to vector<1x8x1xf32>
    tpu.vector_store %arg4[%c0_19, %c0_20, %c0_21], %20 {strides = array<i32>} : memref<1x8x1xf32, #tpu.memory_space<vmem>>, vector<1x8x1xf32>,
    %21 = arith.mulf %12, %12 : vector<8x16xf32>
    %cst_22 = arith.constant dense<0.000000e+00> : vector<8xf32>
    %22 = vector.multi_reduction <add>, %21, %cst_22 [1] : vector<8x16xf32> to vector<8xf32>
    %23 = vector.shape_cast %22 : vector<8xf32> to vector<8x1xf32>
    %c0_23 = arith.constant 0 : index
    %c0_24 = arith.constant 0 : index
    %c0_25 = arith.constant 0 : index
    %24 = vector.load %arg5[%c0_23, %c0_24, %c0_25] : memref<1x8x1xf32, #tpu.memory_space<vmem>>, vector<1x8x1xf32>
    %25 = vector.shape_cast %24 : vector<1x8x1xf32> to vector<8x1xf32>
    %26 = vector.shape_cast %23 : vector<8x1xf32> to vector<1x8x1xf32>
    tpu.vector_store %arg5[%c0_23, %c0_24, %c0_25], %26 {strides = array<i32>} : memref<1x8x1xf32, #tpu.memory_space<vmem>>, vector<1x8x1xf32>,
    return
  }
  func.func @transform_0(%arg0: i32) -> (i32, i32, i32) {
    %c0_i32 = arith.constant 0 : i32
    %c0_i32_0 = arith.constant 0 : i32
    %c0_i32_1 = arith.constant 0 : i32
    return %arg0, %c0_i32, %c0_i32_0 : i32, i32, i32
  }
  func.func @transform_1(%arg0: i32) -> (i32, i32) {
    %c0_i32 = arith.constant 0 : i32
    %c0_i32_0 = arith.constant 0 : i32
    %c0_i32_1 = arith.constant 0 : i32
    return %c0_i32, %c0_i32_0 : i32, i32
  }
  func.func @transform_2(%arg0: i32) -> (i32, i32, i32) {
    %c0_i32 = arith.constant 0 : i32
    %c0_i32_0 = arith.constant 0 : i32
    %c0_i32_1 = arith.constant 0 : i32
    return %arg0, %c0_i32, %c0_i32_0 : i32, i32, i32
  }
  func.func @transform_3(%arg0: i32) -> (i32, i32, i32) {
    %c0_i32 = arith.constant 0 : i32
    %c0_i32_0 = arith.constant 0 : i32
    %c0_i32_1 = arith.constant 0 : i32
    return %arg0, %c0_i32, %c0_i32_0 : i32, i32, i32
  }
  func.func @transform_4(%arg0: i32) -> (i32, i32, i32) {
    %c0_i32 = arith.constant 0 : i32
    %c0_i32_0 = arith.constant 0 : i32
    %c0_i32_1 = arith.constant 0 : i32
    return %arg0, %c0_i32, %c0_i32_0 : i32, i32, i32
  }
}

module attributes {stable_mosaic.version = 11 : i64} {
  func.func @_bn_relu_conv_stats_kernel(%arg0: i32, %arg1: memref<1x8x16xf32, #tpu.memory_space<vmem>>, %arg2: memref<8x1xf32, #tpu.memory_space<vmem>>, %arg3: memref<8x1xf32, #tpu.memory_space<vmem>>, %arg4: memref<8x24xf32, #tpu.memory_space<vmem>>, %arg5: memref<1x8x16xf32, #tpu.memory_space<vmem>>, %arg6: memref<1x8x1xf32, #tpu.memory_space<vmem>>, %arg7: memref<1x8x1xf32, #tpu.memory_space<vmem>>, %arg8: memref<8x18xf32, #tpu.memory_space<vmem>>) attributes {dimension_semantics = [#tpu.dimension_semantics<parallel>], iteration_bounds = array<i64: 2>, scalar_prefetch = 0 : i64, scratch_operands = 1 : i64, tpu.core_type = #tpu.core_type<tc>, window_params = [{transform_indices = @transform_0, window_bounds = array<i64: 1, 8, 16>}, {pipeline_mode = #tpu.pipeline_mode<synchronous>, transform_indices = @transform_1, window_bounds = array<i64: 8, 1>}, {pipeline_mode = #tpu.pipeline_mode<synchronous>, transform_indices = @transform_2, window_bounds = array<i64: 8, 1>}, {pipeline_mode = #tpu.pipeline_mode<synchronous>, transform_indices = @transform_3, window_bounds = array<i64: 8, 24>}, {transform_indices = @transform_4, window_bounds = array<i64: 1, 8, 16>}, {transform_indices = @transform_5, window_bounds = array<i64: 1, 8, 1>}, {transform_indices = @transform_6, window_bounds = array<i64: 1, 8, 1>}]} {
    %c0 = arith.constant 0 : index
    %c0_0 = arith.constant 0 : index
    %c0_1 = arith.constant 0 : index
    %0 = vector.load %arg1[%c0, %c0_0, %c0_1] : memref<1x8x16xf32, #tpu.memory_space<vmem>>, vector<1x8x16xf32>
    %1 = vector.shape_cast %0 : vector<1x8x16xf32> to vector<8x16xf32>
    %c0_2 = arith.constant 0 : index
    %c0_3 = arith.constant 0 : index
    %2 = vector.load %arg2[%c0_2, %c0_3] : memref<8x1xf32, #tpu.memory_space<vmem>>, vector<8x1xf32>
    %3 = vector.broadcast %2 : vector<8x1xf32> to vector<8x16xf32>
    %4 = arith.mulf %1, %3 : vector<8x16xf32>
    %c0_4 = arith.constant 0 : index
    %c0_5 = arith.constant 0 : index
    %5 = vector.load %arg3[%c0_4, %c0_5] : memref<8x1xf32, #tpu.memory_space<vmem>>, vector<8x1xf32>
    %6 = vector.broadcast %5 : vector<8x1xf32> to vector<8x16xf32>
    %7 = arith.addf %4, %6 : vector<8x16xf32>
    %cst = arith.constant 0.000000e+00 : f32
    %8 = vector.broadcast %cst : f32 to vector<8x16xf32>
    %9 = arith.maximumf %7, %8 : vector<8x16xf32>
    %cst_6 = arith.constant 0.000000e+00 : f32
    %10 = vector.broadcast %cst_6 : f32 to vector<8x1xf32>
    %c0_7 = arith.constant 0 : index
    %c0_8 = arith.constant 0 : index
    %11 = vector.load %arg8[%c0_7, %c0_8] : memref<8x18xf32, #tpu.memory_space<vmem>>, vector<8x1xf32>
    tpu.vector_store %arg8[%c0_7, %c0_8], %10 {strides = array<i32>} : memref<8x18xf32, #tpu.memory_space<vmem>>, vector<8x1xf32>,
    %cst_9 = arith.constant 0.000000e+00 : f32
    %12 = vector.broadcast %cst_9 : f32 to vector<8x1xf32>
    %c0_10 = arith.constant 0 : index
    %c17 = arith.constant 17 : index
    %13 = vector.load %arg8[%c0_10, %c17] : memref<8x18xf32, #tpu.memory_space<vmem>>, vector<8x1xf32>
    tpu.vector_store %arg8[%c0_10, %c17], %12 {strides = array<i32>} : memref<8x18xf32, #tpu.memory_space<vmem>>, vector<8x1xf32>,
    %c0_11 = arith.constant 0 : index
    %c1 = arith.constant 1 : index
    %14 = vector.load %arg8[%c0_11, %c1] : memref<8x18xf32, #tpu.memory_space<vmem>>, vector<8x16xf32>
    tpu.vector_store %arg8[%c0_11, %c1], %9 {strides = array<i32>} : memref<8x18xf32, #tpu.memory_space<vmem>>, vector<8x16xf32>,
    %c0_12 = arith.constant 0 : index
    %c0_13 = arith.constant 0 : index
    %15 = vector.load %arg8[%c0_12, %c0_13] : memref<8x18xf32, #tpu.memory_space<vmem>>, vector<8x16xf32>
    %c0_14 = arith.constant 0 : index
    %c1_15 = arith.constant 1 : index
    %16 = vector.load %arg8[%c0_14, %c1_15] : memref<8x18xf32, #tpu.memory_space<vmem>>, vector<8x16xf32>
    %c0_16 = arith.constant 0 : index
    %c2 = arith.constant 2 : index
    %17 = vector.load %arg8[%c0_16, %c2] : memref<8x18xf32, #tpu.memory_space<vmem>>, vector<8x16xf32>
    %18 = tpu.concatenate %15, %16, %17 in 0 : vector<8x16xf32>, vector<8x16xf32>, vector<8x16xf32> -> vector<24x16xf32>
    %c0_17 = arith.constant 0 : index
    %c0_18 = arith.constant 0 : index
    %19 = vector.load %arg4[%c0_17, %c0_18] : memref<8x24xf32, #tpu.memory_space<vmem>>, vector<8x24xf32>
    %cst_19 = arith.constant dense<0.000000e+00> : vector<8x16xf32>
    %20 = tpu.matmul %19, %18, %cst_19 {dimension_numbers = #tpu.dot_dimension_numbers<[1], [0], [0], [1], [0, 0, 1, 1], [], []>} : vector<8x24xf32>, vector<24x16xf32>, vector<8x16xf32> -> vector<8x16xf32>
    %c0_20 = arith.constant 0 : index
    %c0_21 = arith.constant 0 : index
    %c0_22 = arith.constant 0 : index
    %21 = vector.load %arg5[%c0_20, %c0_21, %c0_22] : memref<1x8x16xf32, #tpu.memory_space<vmem>>, vector<1x8x16xf32>
    %22 = vector.shape_cast %21 : vector<1x8x16xf32> to vector<8x16xf32>
    %23 = vector.shape_cast %20 : vector<8x16xf32> to vector<1x8x16xf32>
    tpu.vector_store %arg5[%c0_20, %c0_21, %c0_22], %23 {strides = array<i32>} : memref<1x8x16xf32, #tpu.memory_space<vmem>>, vector<1x8x16xf32>,
    %cst_23 = arith.constant dense<0.000000e+00> : vector<8xf32>
    %24 = vector.multi_reduction <add>, %20, %cst_23 [1] : vector<8x16xf32> to vector<8xf32>
    %25 = vector.shape_cast %24 : vector<8xf32> to vector<8x1xf32>
    %c0_24 = arith.constant 0 : index
    %c0_25 = arith.constant 0 : index
    %c0_26 = arith.constant 0 : index
    %26 = vector.load %arg6[%c0_24, %c0_25, %c0_26] : memref<1x8x1xf32, #tpu.memory_space<vmem>>, vector<1x8x1xf32>
    %27 = vector.shape_cast %26 : vector<1x8x1xf32> to vector<8x1xf32>
    %28 = vector.shape_cast %25 : vector<8x1xf32> to vector<1x8x1xf32>
    tpu.vector_store %arg6[%c0_24, %c0_25, %c0_26], %28 {strides = array<i32>} : memref<1x8x1xf32, #tpu.memory_space<vmem>>, vector<1x8x1xf32>,
    %29 = arith.mulf %20, %20 : vector<8x16xf32>
    %cst_27 = arith.constant dense<0.000000e+00> : vector<8xf32>
    %30 = vector.multi_reduction <add>, %29, %cst_27 [1] : vector<8x16xf32> to vector<8xf32>
    %31 = vector.shape_cast %30 : vector<8xf32> to vector<8x1xf32>
    %c0_28 = arith.constant 0 : index
    %c0_29 = arith.constant 0 : index
    %c0_30 = arith.constant 0 : index
    %32 = vector.load %arg7[%c0_28, %c0_29, %c0_30] : memref<1x8x1xf32, #tpu.memory_space<vmem>>, vector<1x8x1xf32>
    %33 = vector.shape_cast %32 : vector<1x8x1xf32> to vector<8x1xf32>
    %34 = vector.shape_cast %31 : vector<8x1xf32> to vector<1x8x1xf32>
    tpu.vector_store %arg7[%c0_28, %c0_29, %c0_30], %34 {strides = array<i32>} : memref<1x8x1xf32, #tpu.memory_space<vmem>>, vector<1x8x1xf32>,
    return
  }
  func.func @transform_0(%arg0: i32) -> (i32, i32, i32) {
    %c0_i32 = arith.constant 0 : i32
    %c0_i32_0 = arith.constant 0 : i32
    %c0_i32_1 = arith.constant 0 : i32
    return %arg0, %c0_i32, %c0_i32_0 : i32, i32, i32
  }
  func.func @transform_1(%arg0: i32) -> (i32, i32) {
    %c0_i32 = arith.constant 0 : i32
    %c0_i32_0 = arith.constant 0 : i32
    %c0_i32_1 = arith.constant 0 : i32
    return %c0_i32, %c0_i32_0 : i32, i32
  }
  func.func @transform_2(%arg0: i32) -> (i32, i32) {
    %c0_i32 = arith.constant 0 : i32
    %c0_i32_0 = arith.constant 0 : i32
    %c0_i32_1 = arith.constant 0 : i32
    return %c0_i32, %c0_i32_0 : i32, i32
  }
  func.func @transform_3(%arg0: i32) -> (i32, i32) {
    %c0_i32 = arith.constant 0 : i32
    %c0_i32_0 = arith.constant 0 : i32
    %c0_i32_1 = arith.constant 0 : i32
    return %c0_i32, %c0_i32_0 : i32, i32
  }
  func.func @transform_4(%arg0: i32) -> (i32, i32, i32) {
    %c0_i32 = arith.constant 0 : i32
    %c0_i32_0 = arith.constant 0 : i32
    %c0_i32_1 = arith.constant 0 : i32
    return %arg0, %c0_i32, %c0_i32_0 : i32, i32, i32
  }
  func.func @transform_5(%arg0: i32) -> (i32, i32, i32) {
    %c0_i32 = arith.constant 0 : i32
    %c0_i32_0 = arith.constant 0 : i32
    %c0_i32_1 = arith.constant 0 : i32
    return %arg0, %c0_i32, %c0_i32_0 : i32, i32, i32
  }
  func.func @transform_6(%arg0: i32) -> (i32, i32, i32) {
    %c0_i32 = arith.constant 0 : i32
    %c0_i32_0 = arith.constant 0 : i32
    %c0_i32_1 = arith.constant 0 : i32
    return %arg0, %c0_i32, %c0_i32_0 : i32, i32, i32
  }
}

module attributes {stable_mosaic.version = 11 : i64} {
  func.func @_bn_relu_res_kernel(%arg0: i32, %arg1: memref<1x8x16xf32, #tpu.memory_space<vmem>>, %arg2: memref<8x1xf32, #tpu.memory_space<vmem>>, %arg3: memref<8x1xf32, #tpu.memory_space<vmem>>, %arg4: memref<1x4x16xf32, #tpu.memory_space<vmem>>, %arg5: memref<1x8x16xf32, #tpu.memory_space<vmem>>) attributes {dimension_semantics = [#tpu.dimension_semantics<parallel>], iteration_bounds = array<i64: 2>, scalar_prefetch = 0 : i64, scratch_operands = 0 : i64, tpu.core_type = #tpu.core_type<tc>, window_params = [{transform_indices = @transform_0, window_bounds = array<i64: 1, 8, 16>}, {pipeline_mode = #tpu.pipeline_mode<synchronous>, transform_indices = @transform_1, window_bounds = array<i64: 8, 1>}, {pipeline_mode = #tpu.pipeline_mode<synchronous>, transform_indices = @transform_2, window_bounds = array<i64: 8, 1>}, {transform_indices = @transform_3, window_bounds = array<i64: 1, 4, 16>}, {transform_indices = @transform_4, window_bounds = array<i64: 1, 8, 16>}]} {
    %c0 = arith.constant 0 : index
    %c0_0 = arith.constant 0 : index
    %c0_1 = arith.constant 0 : index
    %0 = vector.load %arg1[%c0, %c0_0, %c0_1] : memref<1x8x16xf32, #tpu.memory_space<vmem>>, vector<1x8x16xf32>
    %1 = vector.shape_cast %0 : vector<1x8x16xf32> to vector<8x16xf32>
    %c0_2 = arith.constant 0 : index
    %c0_3 = arith.constant 0 : index
    %2 = vector.load %arg2[%c0_2, %c0_3] : memref<8x1xf32, #tpu.memory_space<vmem>>, vector<8x1xf32>
    %3 = vector.broadcast %2 : vector<8x1xf32> to vector<8x16xf32>
    %4 = arith.mulf %1, %3 : vector<8x16xf32>
    %c0_4 = arith.constant 0 : index
    %c0_5 = arith.constant 0 : index
    %5 = vector.load %arg3[%c0_4, %c0_5] : memref<8x1xf32, #tpu.memory_space<vmem>>, vector<8x1xf32>
    %6 = vector.broadcast %5 : vector<8x1xf32> to vector<8x16xf32>
    %7 = arith.addf %4, %6 : vector<8x16xf32>
    %cst = arith.constant 0.000000e+00 : f32
    %8 = vector.broadcast %cst : f32 to vector<8x16xf32>
    %9 = arith.maximumf %7, %8 : vector<8x16xf32>
    %c0_6 = arith.constant 0 : index
    %c0_7 = arith.constant 0 : index
    %c0_8 = arith.constant 0 : index
    %10 = vector.load %arg4[%c0_6, %c0_7, %c0_8] : memref<1x4x16xf32, #tpu.memory_space<vmem>>, vector<1x4x16xf32>
    %11 = vector.shape_cast %10 : vector<1x4x16xf32> to vector<4x16xf32>
    %12 = tpu.concatenate %11, %11 in 0 : vector<4x16xf32>, vector<4x16xf32> -> vector<8x16xf32>
    %13 = arith.addf %9, %12 : vector<8x16xf32>
    %c0_9 = arith.constant 0 : index
    %c0_10 = arith.constant 0 : index
    %c0_11 = arith.constant 0 : index
    %14 = vector.load %arg5[%c0_9, %c0_10, %c0_11] : memref<1x8x16xf32, #tpu.memory_space<vmem>>, vector<1x8x16xf32>
    %15 = vector.shape_cast %14 : vector<1x8x16xf32> to vector<8x16xf32>
    %16 = vector.shape_cast %13 : vector<8x16xf32> to vector<1x8x16xf32>
    tpu.vector_store %arg5[%c0_9, %c0_10, %c0_11], %16 {strides = array<i32>} : memref<1x8x16xf32, #tpu.memory_space<vmem>>, vector<1x8x16xf32>,
    return
  }
  func.func @transform_0(%arg0: i32) -> (i32, i32, i32) {
    %c0_i32 = arith.constant 0 : i32
    %c0_i32_0 = arith.constant 0 : i32
    %c0_i32_1 = arith.constant 0 : i32
    return %arg0, %c0_i32, %c0_i32_0 : i32, i32, i32
  }
  func.func @transform_1(%arg0: i32) -> (i32, i32) {
    %c0_i32 = arith.constant 0 : i32
    %c0_i32_0 = arith.constant 0 : i32
    %c0_i32_1 = arith.constant 0 : i32
    return %c0_i32, %c0_i32_0 : i32, i32
  }
  func.func @transform_2(%arg0: i32) -> (i32, i32) {
    %c0_i32 = arith.constant 0 : i32
    %c0_i32_0 = arith.constant 0 : i32
    %c0_i32_1 = arith.constant 0 : i32
    return %c0_i32, %c0_i32_0 : i32, i32
  }
  func.func @transform_3(%arg0: i32) -> (i32, i32, i32) {
    %c0_i32 = arith.constant 0 : i32
    %c0_i32_0 = arith.constant 0 : i32
    %c0_i32_1 = arith.constant 0 : i32
    return %arg0, %c0_i32, %c0_i32_0 : i32, i32, i32
  }
  func.func @transform_4(%arg0: i32) -> (i32, i32, i32) {
    %c0_i32 = arith.constant 0 : i32
    %c0_i32_0 = arith.constant 0 : i32
    %c0_i32_1 = arith.constant 0 : i32
    return %arg0, %c0_i32, %c0_i32_0 : i32, i32, i32
  }
}

</mosaic_0001>

<bundles_post_ra>
// kernel: resblock_forward.4
= control target key start
LH: loop header
LB: loop body
LE: loop exit
PB: predicated region body
PF: predicated region fallthrough
CT: control target
= control target key end

     0   :  { %s597_s21 = smov 0   ;;  %s638_s0 = inlined_call_operand.vmem [shape: f32[2,8,16], index: 0, kind: input, shape index: {}]   ;;  %s639_s1 = inlined_call_operand.vmem [shape: f32[8,1], index: 1, kind: input, shape index: {}]   ;;  %s640_s2 = inlined_call_operand.vmem [shape: f32[8,1], index: 2, kind: input, shape index: {}]   ;;  %s641_s3 = inlined_call_operand.vmem [shape: f32[8,24], index: 3, kind: input, shape index: {}]   ;;  %s642_s4 = inlined_call_operand.vmem [shape: f32[2,8,16], index: 4, kind: output, shape index: {0}]   ;;  %s643_s5 = inlined_call_operand.vmem [shape: f32[2,8,1], index: 5, kind: output, shape index: {1}]   ;;  %s644_s6 = inlined_call_operand.vmem [shape: f32[2,8,1], index: 6, kind: output, shape index: {2}]  }
   0x1 LB: > { %s503_s22 = sadd.s32 4294967295, %s553_s21   ;;  %p507_p0 = scmp.ge.s32.totalorder %s553_s21, 1  ;;  %s553_s21 = sphi %s597_s21, %s17_s21  }
   0x2   : > { %p216_p1 = scmp.lt.s32.totalorder %s553_s21, 3 }
   0x4   : > { %p217_p2 = pnand %p507_p0, %p216_p1 }
   0x5   : > { %v269_v0 = vld [vmem:[%s639_s1] sm:$0xff] (!%p217_p2)  ;;  %v555_v1 = vmov (!%p217_p2), 0   ;;  %vm284_vm0 = vcmask (!%p217_p2), 7168   ;;  %vm286_vm1 = vcmask (!%p217_p2), 146568   ;;  %v556_v3 = vmov (!%p217_p2), 0.0   ;;  %p252_p3 = scmp.lt.s32.totalorder (!%p217_p2), %s503_s22, 1 }
   0x6   : > { %220 = sbr.rel (%p217_p2) target bundleno = 746 (0x2ea), region = 36  ;;  %546 = vset.pattern.permute.xlu0 (!%p217_p2), %v555_v1  ;;  %v276_v2 = vld [vmem:[%s640_s2] sm:$0xff] (!%p217_p2)  ;;  %285 = vst.msk [vmem:[#allocation2] sm:$0xff] (!%p217_p2), %vm284_vm0, %v556_v3  ;;  %s557_s7 = smov (!%p217_p2), 1   ;;  %v558_v10 = vmov (!%p217_p2), 0.0|0.0   ;;  %vm292_vm2 = vcmask (!%p217_p2), 138248  }
   0x7   : > { %272 = vperm.xlu0 (!%p217_p2), %546, %v269_v0   ;;  %287 = vst.msk [vmem:[#allocation2] sm:$0xff] (!%p217_p2), %vm286_vm1, %v556_v3  ;;  %528 = vmatprep.subr.bf16.mxu0 (!%p217_p2), %v558_v10  ;;  %vm559_vm3 = vmmov (!%p217_p2), 0   ;;  %s560_s8 = smov (!%p217_p2), 126   ;;  %s561_s9 = smov (!%p217_p2), 127   ;;  %v302_v15 = vld [vmem:[%s641_s3] sm:$0xff] (!%p217_p2)  ;;  %vm303_vm4 = vcmask (!%p217_p2), 195584  }
   0x8   : > { %525 = vmatprep.mubr.msk.f32.mxu0 (!%p217_p2), %vm559_vm3, %v556_v3  ;;  %vm377_vm5 = vcmask (!%p217_p2), 130048  }
   0xb   : > { %279 = vperm.xlu0 (!%p217_p2), %546, %v276_v2  }
   0xd   : > { %s646_s22 = smov (!%p252_p3, %s503_s22), 1 }
   0xe   : > { %s612_s27 = sshll.u32 %s646_s22, 3 }
   0xf   : > { %s255_s30 = scalar_lea.vmem %s638_s0, %s612_s27  ;;  %s259_s14 = scalar_lea.vmem %s642_s4, %s612_s27 }
  0x10   : > { %v268_v5 = vld [vmem:[%s255_s30] sm:$0xff]  ;;  %s263_s17 = scalar_lea.vmem %s643_s5, %s612_s27  ;;  %s267_s20 = scalar_lea.vmem %s644_s6, %s612_s27 }
  0x86   : > { %v273_v4 = vpop.permute.xlu0 %272 }
  0x87   : > { %v275_v6 = vmul.f32 %v273_v4, %v268_v5 }
  0x8a   : > { %v280_v7 = vpop.permute.xlu0 %279 }
  0x8b   : > { %v282_v8 = vadd.f32 %v280_v7, %v275_v6 }
  0x8d   : > { %v283_v9 = vmax.f32 %v282_v8, 0.0 }
  0x8f   : > { %289 = vrot.lane.b32.xlu1 %v283_v9, %s557_s7 }
 0x101   : > { %v290_v11 = vpop.permute.xlu1 %289 }
 0x102   : > { %293 = vst.msk [vmem:[#allocation2] sm:$0xff] %vm292_vm2, %v290_v11 }
 0x109   : > { %v294_v12 = vld [vmem:[#allocation2] sm:$0xff] }
 0x10a   : > { %299 = vrot.lane.b32.xlu0 %v294_v12, %s560_s8  ;;  %296 = vrot.lane.b32.xlu1 %v294_v12, %s561_s9 }
 0x17c   : > { %v297_v13 = vpop.permute.xlu1 %296  ;;  %v300_v16 = vpop.permute.xlu0 %299 }
 0x17d   : > { %v529_v14 = vpack.c.bf16 %v297_v13, %v294_v12 }
 0x17f   : > { %530 = vmatpush3.bf16.msra.mxu0 %v529_v14 }
 0x180   : > { %523 = vmatprep.subr.mxu0 %v556_v3 }
 0x183   : > { %524 = vmatpush3.msra.mxu0 %v300_v16 }
 0x184   : > { %526 = vmatmul.mubr.msk.f32.vlgmr.msra.gmra.mrb[0].mxu0 %vm303_vm4, %v302_v15 }
 0x257   : > { %v373_v17 = vpop.f32.mrb[0].mxu0 }
 0x258   : > { %v527_v18 = vpop.f32.mrb[1].mxu0  ;;  %v379_v19 = vsel %vm377_vm5, %v373_v17, 0.0  ;;  %378 = vst.msk [vmem:[%s259_s14] sm:$0xff] %vm377_vm5, %v373_v17  ;;  %v383_v20 = vmul.f32 %v373_v17, %v373_v17 }
 0x259   : > { %380 = vadd.xlane.f32.xlu1 %v379_v19 }
 0x25a   : > { %v384_v21 = vsel %vm377_vm5, %v383_v20, 0.0 }
 0x25b   : > { %385 = vadd.xlane.f32.xlu0 %v384_v21 }
 0x2e6   : > { %v381_v22 = vpop.xlane.xlu1 %380 }
 0x2e7   : > { %382 = vst.msk [vmem:[%s263_s17] sm:$0xff] %vm284_vm0, %v381_v22 }
 0x2e8   : > { %v386_v23 = vpop.xlane.xlu0 %385 }
 0x2e9   : > { %387 = vst.msk [vmem:[%s267_s20] sm:$0xff] %vm284_vm0, %v386_v23 }
 0x2ea PF: > { %s17_s21 = sadd.s32 1, %s553_s21  }
 0x2eb   : > { %p14_p4 = scmp.ge.s32.totalorder %s17_s21, 4  }
 0x2ed   :  { %16 = sbr.rel (!%p14_p4) target bundleno = 1 (0x1), region = 90 }

// kernel: resblock_forward.5
= control target key start
LH: loop header
LB: loop body
LE: loop exit
PB: predicated region body
PF: predicated region fallthrough
CT: control target
= control target key end

     0   :  { %9 = vsyncpa [#allocation3], 0  ;;  %s572_s0 = inlined_call_operand.vmem [shape: f32[2,8,16], index: 0, kind: input, shape index: {}]   ;;  %s573_s1 = inlined_call_operand.vmem [shape: f32[8,1], index: 1, kind: input, shape index: {}]   ;;  %s574_s2 = inlined_call_operand.vmem [shape: f32[8,1], index: 2, kind: input, shape index: {}]   ;;  %s575_s3 = inlined_call_operand.vmem [shape: f32[2,4,16], index: 3, kind: input, shape index: {}]   ;;  %s576_s4 = inlined_call_operand.hbm [shape: f32[2,8,16], index: 4, kind: output, shape index: {}]  }
   0x1   :  { %11 = vsyncpa [#allocation3 + $0x1], 0  ;;  %s463_s15 = smov 0   ;;  %s465_s16 = smov 0  }
   0x2   :  { %s467_s17 = smov 0   ;;  %s469_s18 = smov 0  }
   0x3 LB: > { %s484_s19 = sadd.s32 4294967295, %s434_s18   ;;  %s320_s20 = sadd.s32 4294967294, %s434_s18   ;;  %s434_s18 = sphi %s469_s18, %s582_s18   ;;  %s430_s17 = sphi %s467_s17, %s581_s17   ;;  %s426_s16 = sphi %s465_s16, %s580_s16   ;;  %s422_s15 = sphi %s463_s15, %s579_s15  }
   0x4   : > { %s488_s21 = sadd.s32 1, %s434_s18   ;;  %s118_s22 = sadd.s32 1, %s430_s17 }
   0x5   : > { %s115_s23 = ssub.s32 %s434_s18, %s488_s21  ;;  %p128_p0 = scmp.ne.s32.totalorder %s430_s17, %s426_s16 }
   0x6   : > { %p116_p1 = scmp.eq.s32.totalorder %s115_s23, 0  ;;  %p129_p2 = scmp.eq.s32.totalorder %s484_s19, 1 }
   0x7   : > { %p134_p3 = scmp.ne.s32.totalorder %s426_s16, %s422_s15  ;;  %p135_p4 = scmp.eq.s32.totalorder %s320_s20, 1 }
   0x8   : > { %s499_s24 = scalar_select %p116_p1, %s430_s17, %s118_s22  }
   0x9   : > { %p501_p5 = por %p129_p2, %p128_p0  ;;  %p505_p6 = por %p135_p4, %p134_p3 }
   0xa   : > { %p323_p7 = scmp.ge.s32.totalorder %s434_s18, 1  ;;  %p173_p8 = scmp.lt.s32.totalorder %s434_s18, 3 }
   0xc   : > { %p174_p9 = pnand %p323_p7, %p173_p8 }
   0xd   : > { %v211_v0 = vld [vmem:[%s573_s1] sm:$0xff] (!%p174_p9)  ;;  %v436_v1 = vmov (!%p174_p9), 0   ;;  %p202_p10 = scmp.lt.s32.totalorder (!%p174_p9), %s484_s19, 1  ;;  %s199_s14 = sand.u32 (!%p174_p9), 1, %s426_s16   ;;  %vm230_vm0 = vcmask (!%p174_p9), 1043456   ;;  %vm233_vm1 = vcmask (!%p174_p9), 130048  }
   0xe   : > { %177 = sbr.rel (%p174_p9) target bundleno = 167 (0xa7), region = 36  ;;  %371 = vset.pattern.permute.xlu0 (!%p174_p9), %v436_v1  ;;  %v218_v2 = vld [vmem:[%s574_s2] sm:$0xff] (!%p174_p9)  ;;  %s324_s20 = sshll.u32 (!%p174_p9), %s199_s14, 3 }
   0xf   : > { %214 = vperm.xlu0 (!%p174_p9), %371, %v211_v0   ;;  %s328_s22 = sshll.u32 (!%p174_p9), %s484_s19, 7  ;;  %s201_s23 = scalar_lea.vmem (!%p174_p9), [#allocation2], %s324_s20 }
  0x10   : > { %s249_s27 = sshll.u32 (!%p174_p9), %s201_s23, 4  ;;  %s530_s30 = scalar_lea.hbm (!%p174_p9), %s576_s4, %s328_s22  ;;  %s532_s27 = int_to_ptr.vmem [resolvable:$true] %s249_s27 }
  0x13   : > { %221 = vperm.xlu0 (!%p174_p9), %371, %v218_v2  }
  0x15   : > { %s203_s5 = scalar_select %p202_p10, %s484_s19, 1 }
  0x16   : > { %s437_s19 = smov [#allocation2]  }
  0x17   : > { %s326_s6 = sshll.u32 %s203_s5, 2  ;;  %s325_s7 = sshll.u32 %s203_s5, 3 }
  0x18   : > { %s209_s10 = scalar_lea.vmem %s575_s3, %s326_s6  ;;  %s205_s13 = scalar_lea.vmem %s572_s0, %s325_s7 }
  0x19   : > { %v226_v3 = vld [vmem:[%s209_s10] sm:$0xf]  ;;  %s236_s5 = scalar_lea.sflag [#allocation3], %s199_s14  ;;  %s372_s6 = scalar_lea.vmem %s532_s27, 128 }
  0x1a   : > { %v210_v5 = vld [vmem:[%s205_s13] sm:$0xff]  ;;  %v228_v6 = vrot.slane %v226_v3, 4  ;;  %p373_p11 = scmp.ne.s32.totalorder %s532_s27, %s372_s6  ;;  %s376_s7 = sshll.u32 %s437_s19, 4  ;;  %s377_s7 = int_to_ptr.vmem [resolvable:$false] %s376_s7 }
  0x1b   : > { %s378_s8 = scalar_lea.vmem %s377_s7, 256  ;;  %p379_p0 = scmp.lt.s32.totalorder %s532_s27, %s377_s7 }
  0x1c   : > { %v231_v10 = vsel %vm230_vm0, %v226_v3, %v228_v6  ;;  %p374_p12 = pnand %p373_p11, %p501_p5  ;;  %p380_p1 = scmp.lt.s32.totalorder %s378_s8, %s372_s6 }
  0x1e   : > { %p375_p13 = pneg %p374_p12  ;;  %p381_p2 = por %p380_p1, %p379_p0 }
  0x20   : > { %p382_p3 = pnand %p381_p2, %p375_p13 }
  0x8e   : > { %v215_v4 = vpop.permute.xlu0 %214 }
  0x8f   : > { %v217_v7 = vmul.f32 %v215_v4, %v210_v5 }
  0x92   : > { %v222_v8 = vpop.permute.xlu0 %221 }
  0x93   : > { %v224_v9 = vadd.f32 %v222_v8, %v217_v7 }
  0x95   : > { %v225_v11 = vmax.f32 %v224_v9, 0.0 }
  0x97   : > { %v232_v12 = vadd.f32 %v231_v10, %v225_v11 }
  0x99   : > { %234 = vst.msk [vmem:[%s201_s23] sm:$0xff] %vm233_vm1, %v232_v12 }
  0x9a   : > { %385 = shalt.err (!%p382_p3)
}
  0x9b   : > { %s386_s9 = scalar_lea.hbm %s530_s30, 128  ;;  %s390_s12 = scalar_lea.hbm %s576_s4, 256 }
  0x9c   : > { %p387_p4 = scmp.ne.s32.totalorder %s530_s30, %s386_s9  ;;  %p391_p9 = scmp.lt.u32.totalorder %s530_s30, %s576_s4 }
  0x9d   : > { %p392_p10 = scmp.lt.u32.totalorder %s390_s12, %s386_s9  ;;  %p394_p12 = scmp.lt.u32.totalorder %s386_s9, %s530_s30 }
  0x9e   : > { %p388_p7 = pnand %p387_p4, %p501_p5 }
  0x9f   : > { %p393_p11 = por %p392_p10, %p391_p9 }
  0xa0   : > { %p389_p8 = pneg %p388_p7 }
  0xa1   : > { %p395_p13 = por %p394_p12, %p393_p11 }
  0xa3   : > { %p396_p0 = pnand %p395_p13, %p389_p8 }
  0xa5   : > { %399 = shalt.err (!%p396_p0)
}
  0xa6   : > { %331 = dma.vmem_to_hbm [thread:$0]  (%p501_p5), %s532_s27, 128, %s530_s30, %s236_s5  }
  0xa7 PF: > { %p337_p1 = scmp.ge.s32.totalorder %s434_s18, 2  ;;  %s261_s20 = sand.u32 1, %s422_s15  }
  0xa8   : > { %s262_s22 = scalar_lea.sflag [#allocation3], %s261_s20 }
  0xa9   : > { %p334_p2 = pnand %p337_p1, %p505_p6 }
  0xab   : > { %417 = dma.done.wait (!%p334_p2), %s262_s22, 128  }
  0xac   : > { %419 = vsyncadd (!%p334_p2), %s262_s22, 4294967168  ;;  %p14_p3 = scmp.ge.s32.totalorder %s488_s21, 4   ;;  %s579_s15 = smov %s426_s16 }
  0xad   : > { %s580_s16 = smov %s430_s17  ;;  %s581_s17 = smov %s499_s24 }
  0xae   : > { %s582_s18 = smov %s488_s21  ;;  %16 = sbr.rel (!%p14_p3) target bundleno = 3 (0x3), region = 74 }
  0xb5   :  { %267 = vsyncpa [#allocation3], 1 }
  0xb6   :  { %269 = vsyncpa [#allocation3 + $0x1], 1 }

// kernel: resblock_forward.3
= control target key start
LH: loop header
LB: loop body
LE: loop exit
PB: predicated region body
PF: predicated region fallthrough
CT: control target
= control target key end

     0   :  { %s521_s15 = smov 0   ;;  %s551_s0 = inlined_call_operand.vmem [shape: f32[2,4,16], index: 0, kind: input, shape index: {}]   ;;  %s552_s1 = inlined_call_operand.vmem [shape: f32[8,12], index: 1, kind: input, shape index: {}]   ;;  %s553_s2 = inlined_call_operand.vmem [shape: f32[2,8,16], index: 2, kind: output, shape index: {0}]   ;;  %s554_s3 = inlined_call_operand.vmem [shape: f32[2,8,1], index: 3, kind: output, shape index: {1}]   ;;  %s555_s4 = inlined_call_operand.vmem [shape: f32[2,8,1], index: 4, kind: output, shape index: {2}]  }
   0x1 LB: > { %s439_s16 = sadd.s32 4294967295, %s487_s15   ;;  %p443_p0 = scmp.ge.s32.totalorder %s487_s15, 1  ;;  %s487_s15 = sphi %s521_s15, %s15_s15  }
   0x2   : > { %p166_p1 = scmp.lt.s32.totalorder %s487_s15, 3 }
   0x4   : > { %p167_p2 = pnand %p443_p0, %p166_p1 }
   0x5   : > { %p198_p3 = scmp.lt.s32.totalorder (!%p167_p2), %s439_s16, 1  ;;  %vm215_vm0 = vcmask (!%p167_p2), 3072   ;;  %vm217_vm1 = vcmask (!%p167_p2), 142472   ;;  %v489_v0 = vmov (!%p167_p2), 0.0   ;;  %s490_s21 = smov (!%p167_p2), 1   ;;  %vm223_vm2 = vcmask (!%p167_p2), 134152  }
   0x6   : > { %170 = sbr.rel (%p167_p2) target bundleno = 621 (0x26d), region = 28  ;;  %216 = vst.msk [vmem:[#allocation2] sm:$0xf] (!%p167_p2), %vm215_vm0, %v489_v0  ;;  %v491_v3 = vmov (!%p167_p2), 0.0|0.0   ;;  %vm492_vm3 = vmmov (!%p167_p2), 0   ;;  %s493_s22 = smov (!%p167_p2), 126  }
   0x7   : > { %218 = vst.msk [vmem:[#allocation2] sm:$0xf] (!%p167_p2), %vm217_vm1, %v489_v0  ;;  %462 = vmatprep.subr.bf16.mxu0 (!%p167_p2), %v491_v3  ;;  %459 = vmatprep.mubr.msk.f32.mxu0 (!%p167_p2), %vm492_vm3, %v489_v0  ;;  %s494_s23 = smov (!%p167_p2), 127   ;;  %vm233_vm4 = vcmask (!%p167_p2), 1043456   ;;  %vm495_vm5 = vmmov (!%p167_p2), 1   ;;  %v235_v10 = vld [vmem:[%s552_s1] sm:$0xff] (!%p167_p2) }
   0x8   : > { %vm464_vm6 = vmpackc.low (!%p167_p2), %vm233_vm4, %vm495_vm5  ;;  %vm236_vm7 = vcmask (!%p167_p2), 97280   ;;  %vm312_vm8 = vcmask (!%p167_p2), 130048   ;;  %vm317_vm9 = vcmask (!%p167_p2), 7168  }
   0xd   : > { %s557_s16 = smov (!%p198_p3, %s439_s16), 1 }
   0xe   : > { %s444_s17 = sshll.u32 %s557_s16, 2  ;;  %s445_s26 = sshll.u32 %s557_s16, 3 }
   0xf   : > { %s201_s20 = scalar_lea.vmem %s551_s0, %s444_s17  ;;  %s205_s29 = scalar_lea.vmem %s553_s2, %s445_s26 }
  0x10   : > { %v214_v1 = vld [vmem:[%s201_s20] sm:$0xf]  ;;  %s209_s6 = scalar_lea.vmem %s554_s3, %s445_s26  ;;  %s213_s9 = scalar_lea.vmem %s555_s4, %s445_s26 }
  0x11   : > { %220 = vrot.lane.b32.xlu0 %v214_v1, %s490_s21 }
  0x83   : > { %v221_v2 = vpop.permute.xlu0 %220 }
  0x84   : > { %224 = vst.msk [vmem:[#allocation2] sm:$0xf] %vm223_vm2, %v221_v2 }
  0x8b   : > { %v225_v4 = vld [vmem:[#allocation2] sm:$0xf] }
  0x8c   : > { %231 = vrot.lane.b32.xlu1 %v225_v4, %s493_s22  ;;  %v227_v5 = vrot.slane %v225_v4, 4 }
  0x8e   : > { %228 = vrot.lane.b32.xlu0 %v227_v5, %s494_s23 }
  0xfe   : > { %v232_v7 = vpop.permute.xlu1 %231 }
 0x100   : > { %v229_v6 = vpop.permute.xlu0 %228 }
 0x101   : > { %v234_v8 = vsel %vm233_vm4, %v225_v4, %v229_v6 }
 0x102   : > { %v463_v9 = vpack.c.bf16 %v232_v7, %v234_v8 }
 0x104   : > { %465 = vmatpush3.bf16.msk.msra.mxu0 %vm464_vm6, %v463_v9 }
 0x107   : > { %460 = vmatmul.mubr.msk.f32.vlgmr.msra.gmra.mrb[0].mxu0 %vm236_vm7, %v235_v10 }
 0x1da   : > { %v308_v11 = vpop.f32.mrb[0].mxu0 }
 0x1db   : > { %v461_v12 = vpop.f32.mrb[1].mxu0  ;;  %v314_v13 = vsel %vm312_vm8, %v308_v11, 0.0  ;;  %313 = vst.msk [vmem:[%s205_s29] sm:$0xff] %vm312_vm8, %v308_v11  ;;  %v319_v14 = vmul.f32 %v308_v11, %v308_v11 }
 0x1dc   : > { %315 = vadd.xlane.f32.xlu1 %v314_v13 }
 0x1dd   : > { %v320_v15 = vsel %vm312_vm8, %v319_v14, 0.0 }
 0x1de   : > { %321 = vadd.xlane.f32.xlu0 %v320_v15 }
 0x269   : > { %v316_v16 = vpop.xlane.xlu1 %315 }
 0x26a   : > { %318 = vst.msk [vmem:[%s209_s6] sm:$0xff] %vm317_vm9, %v316_v16 }
 0x26b   : > { %v322_v17 = vpop.xlane.xlu0 %321 }
 0x26c   : > { %323 = vst.msk [vmem:[%s213_s9] sm:$0xff] %vm317_vm9, %v322_v17 }
 0x26d PF: > { %s15_s15 = sadd.s32 1, %s487_s15  }
 0x26e   : > { %p12_p4 = scmp.ge.s32.totalorder %s15_s15, 4  }
 0x270   :  { %14 = sbr.rel (!%p12_p4) target bundleno = 1 (0x1), region = 82 }

</bundles_post_ra>
